<compile_context>
chip_gen: v6e
topology: v6e:2x2x1
jax: 0.10.0
libtpu: 0.0.40
codegen_flags: <defaults>
</compile_context>

<pallas_src>
import functools

import jax
import jax.numpy as jnp
import numpy as np
from jax.experimental import pallas as pl
from jax.experimental.pallas import tpu as pltpu

_COORD_PAD = 8  # 3 coords + norm/bias/scale terms, zero-padded to 8 sublanes


def _continuous_conv_kernel(blkmask_ref, pin_ref, pout_ref, ax_ref, o_ref, *,
                            exp_dtype, dot_dtype, n_in_blocks):
    j = pl.program_id(0)   # output tile (parallel)
    k = pl.program_id(1)   # input / reduction tile (arbitrary)

    @pl.when(k == 0)
    def _init():
        o_ref[...] = jnp.zeros_like(o_ref)

    # Exact tile-level radius sparsity: if the tile AABBs are farther apart
    # than radius, every weight in this (out_tile, in_tile) block is 0.
    @pl.when(blkmask_ref[j * n_in_blocks + k] > 0)
    def _compute():
        # One K=8 MXU dot emits the exp argument directly:
        #   arg[i, o] = (radius^2 - ||p_in_i - p_out_o||^2) / sigma_i^2
        arg = jnp.dot(pin_ref[...], pout_ref[...],
                      preferred_element_type=jnp.float32)
        arg_c = arg.astype(exp_dtype)
        # Radius mask is a compare against the constant 0 (no per-row input);
        # exp runs on the EUP in exp_dtype (bf16 on v6e/v7x).
        w = jnp.where(arg > 0.0, jnp.exp(arg_c), jnp.zeros_like(arg_c))
        # (B, tile_in) @ (tile_in, tile_out) on the MXU, f32 accumulation into
        # the resident output block.  ax already carries alpha*exp(-r^2/s^2).
        o_ref[...] += jnp.dot(ax_ref[...], w.astype(dot_dtype),
                              preferred_element_type=jnp.float32)


def _round_up(n, m=128):
    return ((n + m - 1) // m) * m


def _pick_tile(n, target):
    """Largest multiple of 128 dividing n that is <= target (n % 128 == 0)."""
    target = max(128, (min(target, n) // 128) * 128)
    for t in range(target, 127, -128):
        if n % t == 0:
            return t
    return 128


def continuous_convolution(x, inp_positions, out_positions, alpha, sigma,
                           radius, *, tile_in=1024, tile_out=1024,
                           dot_dtype=jnp.bfloat16, exp_dtype=None):
    """x: (B, N_in); inp_positions: (N_in, 3); out_positions: (N_out, 3);
    alpha: (1, N_in); sigma: (N_in,); radius: connectivity radius (float).

    dot_dtype: operand dtype of the final (B,N_in)@(N_in,N_out) contraction
      (f32 accumulation regardless).
    exp_dtype: dtype of the exp argument / Gaussian weights; defaults to
      dot_dtype.  Use jnp.float32 on v5e (no bf16 VPU/EUP there).
    """
    if exp_dtype is None:
        exp_dtype = dot_dtype
    B, n_in = x.shape
    n_out = out_positions.shape[0]
    f32 = jnp.float32
    r2 = float(radius) * float(radius)

    pin = inp_positions.astype(f32)
    pout = out_positions.astype(f32)
    sig = sigma.reshape(n_in).astype(f32)
    al = alpha.reshape(n_in).astype(f32)
    xf = x.astype(f32)

    # Zero-pad N_in / N_out to multiples of 128 so tiles always divide evenly.
    # Padded input columns have alpha = x = 0 -> contribute exactly 0; padded
    # output columns are sliced off at the end.
    n_in_p, n_out_p = _round_up(n_in), _round_up(n_out)
    if n_in_p != n_in:
        pad = n_in_p - n_in
        pin = jnp.concatenate([pin, jnp.zeros((pad, 3), f32)], axis=0)
        sig = jnp.concatenate([sig, jnp.ones((pad,), f32)], axis=0)
        al = jnp.concatenate([al, jnp.zeros((pad,), f32)], axis=0)
        xf = jnp.concatenate([xf, jnp.zeros((B, pad), f32)], axis=1)
    if n_out_p != n_out:
        pout = jnp.concatenate([pout, jnp.zeros((n_out_p - n_out, 3), f32)],
                               axis=0)

    tile_in = _pick_tile(n_in_p, tile_in)
    # Prefer >= 2 output tiles so both v7x TensorCores get parallel work.
    tgt_out = min(tile_out, n_out_p // 2) if n_out_p >= 256 else tile_out
    tile_out = _pick_tile(n_out_p, tgt_out)
    n_in_blk, n_out_blk = n_in_p // tile_in, n_out_p // tile_out

    inv_sig2 = 1.0 / (sig * sig)     # sigma == 0 -> inf, matches torch 1/0
    pin_sq = jnp.sum(pin * pin, axis=1)
    pout_sq = jnp.sum(pout * pout, axis=1)

    # Fully-folded augmented coordinates: a single (tile_in,8)@(8,tile_out)
    # MXU dot yields arg[i, o] = (r^2 - d2[i, o]) / sigma_i^2.
    pin_aug = jnp.zeros((n_in_p, _COORD_PAD), f32)
    pin_aug = pin_aug.at[:, 0:3].set(2.0 * pin * inv_sig2[:, None])
    pin_aug = pin_aug.at[:, 3].set((r2 - pin_sq) * inv_sig2)
    pin_aug = pin_aug.at[:, 4].set(-inv_sig2)
    pout_aug = jnp.zeros((_COORD_PAD, n_out_p), f32)
    pout_aug = pout_aug.at[0:3, :].set(pout.T)
    pout_aug = pout_aug.at[3, :].set(1.0)
    pout_aug = pout_aug.at[4, :].set(pout_sq)

    # exp((r^2-d2)/s^2) * exp(-r^2/s^2) == exp(-d2/s^2): fold the constant
    # per-input factor into alpha*x host-side (O(N_in), amortized).
    ax = ((al * jnp.exp(-r2 * inv_sig2))[None, :] * xf).astype(dot_dtype)

    # Tile-level block mask from per-tile AABBs (exact skip criterion).
    in_r = pin.reshape(n_in_blk, tile_in, 3)
    out_r = pout.reshape(n_out_blk, tile_out, 3)
    in_lo, in_hi = in_r.min(axis=1), in_r.max(axis=1)
    out_lo, out_hi = out_r.min(axis=1), out_r.max(axis=1)
    gap = jnp.maximum(jnp.maximum(out_lo[:, None, :] - in_hi[None, :, :],
                                  in_lo[None, :, :] - out_hi[:, None, :]), 0.0)
    blkmask = (jnp.sum(gap * gap, axis=-1) < r2).astype(jnp.int32).reshape(-1)

    kernel = functools.partial(_continuous_conv_kernel, exp_dtype=exp_dtype,
                               dot_dtype=dot_dtype, n_in_blocks=n_in_blk)

    dot_bytes = int(np.dtype(dot_dtype).itemsize)
    cost = pl.CostEstimate(
        flops=2 * (_COORD_PAD + B) * n_in_p * n_out_p,
        transcendentals=n_in_p * n_out_p,
        bytes_accessed=(4 * n_in_p * _COORD_PAD * n_out_blk     # pin_aug re-reads
                        + 4 * _COORD_PAD * n_out_p * n_in_blk   # pout_aug
                        + dot_bytes * B * n_in_p * n_out_blk    # ax re-reads
                        + 4 * B * n_out_p))                     # output

    out = pl.pallas_call(
        kernel,
        out_shape=jax.ShapeDtypeStruct((B, n_out_p), jnp.float32),
        grid_spec=pltpu.PrefetchScalarGridSpec(
            num_scalar_prefetch=1,
            grid=(n_out_blk, n_in_blk),
            in_specs=[
                pl.BlockSpec((tile_in, _COORD_PAD), lambda j, k, m: (k, 0)),
                pl.BlockSpec((_COORD_PAD, tile_out), lambda j, k, m: (0, j)),
                pl.BlockSpec((B, tile_in), lambda j, k, m: (0, k)),
            ],
            out_specs=pl.BlockSpec((B, tile_out), lambda j, k, m: (0, j)),
        ),
        compiler_params=pltpu.CompilerParams(
            dimension_semantics=("parallel", "arbitrary"),
            vmem_limit_bytes=48 * 1024 * 1024),
        cost_estimate=cost,
    )(blkmask, pin_aug, pout_aug, ax)
    return out[:, :n_out]


def reference_forward(x, inp_positions, out_positions, alpha, sigma, radius):
    d = inp_positions[None, :, :] - out_positions[:, None, :]   # (N_out,N_in,3)
    d2 = jnp.sum(d * d, axis=-1)
    mask = (d2 < radius * radius).astype(jnp.float32)
    w = jnp.exp(-d2 / (sigma[None, :] ** 2)) * mask
    ax = alpha.reshape(1, -1) * x
    return ax @ w.T


if __name__ == "__main__":
    RADIUS = 0.6
    keys = jax.random.split(jax.random.PRNGKey(0), 12)

    # Positions are snapped to a 1/32 grid so every pairwise squared distance
    # is an exact multiple of 1/1024; radius^2 = 0.36 then sits >= 3.5e-4 away
    # from any attainable d2, so the kernel's MXU-decomposed connectivity test
    # and the reference's direct one agree exactly despite fp rounding.
    def snap(p):
        return jnp.round(p * 32.0) / 32.0

    # ---- Tests 1 & 2: uniform cloud (2x2 grid), f32 and default bf16 paths --
    B, N_IN, N_OUT = 8, 256, 256
    inp_pos = snap(jax.random.uniform(keys[0], (N_IN, 3), jnp.float32))
    out_pos = snap(jax.random.uniform(keys[1], (N_OUT, 3), jnp.float32))
    bound = float(np.sqrt(6.0 / (1 + N_IN)))     # xavier_uniform on (1, N_in)
    alpha = jax.random.uniform(keys[2], (1, N_IN), jnp.float32,
                               minval=-bound, maxval=bound)
    sigma = jnp.ones((N_IN,), jnp.float32)       # module init: ones
    x = jax.random.normal(keys[3], (B, N_IN), jnp.float32)
    ref = reference_forward(x, inp_pos, out_pos, alpha, sigma, RADIUS)

    out_f32 = continuous_convolution(x, inp_pos, out_pos, alpha, sigma, RADIUS,
                                     tile_in=128, tile_out=128,
                                     dot_dtype=jnp.float32,
                                     exp_dtype=jnp.float32)
    jax.block_until_ready(out_f32)
    np.testing.assert_allclose(np.asarray(out_f32), np.asarray(ref),
                               rtol=2e-2, atol=2e-3)

    out_bf16 = continuous_convolution(x, inp_pos, out_pos, alpha, sigma,
                                      RADIUS, tile_in=128, tile_out=128)
    jax.block_until_ready(out_bf16)
    np.testing.assert_allclose(np.asarray(out_bf16), np.asarray(ref),
                               rtol=2e-2, atol=2e-2)

    # ---- Test 3: two well-separated clusters -> exercises the AABB skip ----
    ca_in = snap(jax.random.uniform(keys[4], (128, 3), jnp.float32) * 0.4)
    ca_out = snap(jax.random.uniform(keys[5], (128, 3), jnp.float32) * 0.4)
    off = jnp.array([[2.0, 0.0, 0.0]], jnp.float32)
    inp2 = jnp.concatenate([ca_in, ca_in + off], axis=0)      # (256, 3)
    out2 = jnp.concatenate([ca_out, ca_out + off], axis=0)    # (256, 3)
    alpha2 = jax.random.uniform(keys[6], (1, 256), jnp.float32,
                                minval=-0.2, maxval=0.2)
    sigma2 = jnp.full((256,), 0.8, jnp.float32)
    x2 = jax.random.normal(keys[7], (8, 256), jnp.float32)
    ref2 = reference_forward(x2, inp2, out2, alpha2, sigma2, RADIUS)
    out2k = continuous_convolution(x2, inp2, out2, alpha2, sigma2, RADIUS,
                                   tile_in=128, tile_out=128,
                                   dot_dtype=jnp.float32,
                                   exp_dtype=jnp.float32)
    jax.block_until_ready(out2k)
    np.testing.assert_allclose(np.asarray(out2k), np.asarray(ref2),
                               rtol=2e-2, atol=2e-3)

    # ---- Test 4: ragged sizes -> exercises zero-padding to multiples of 128
    N3_IN, N3_OUT = 200, 176
    inp3 = snap(jax.random.uniform(keys[8], (N3_IN, 3), jnp.float32))
    out3 = snap(jax.random.uniform(keys[9], (N3_OUT, 3), jnp.float32))
    alpha3 = jax.random.uniform(keys[10], (1, N3_IN), jnp.float32,
                                minval=-0.2, maxval=0.2)
    sigma3 = jnp.ones((N3_IN,), jnp.float32)
    x3 = jax.random.normal(keys[11], (8, N3_IN), jnp.float32)
    ref3 = reference_forward(x3, inp3, out3, alpha3, sigma3, RADIUS)
    out3k = continuous_convolution(x3, inp3, out3, alpha3, sigma3, RADIUS,
                                   dot_dtype=jnp.float32,
                                   exp_dtype=jnp.float32)
    jax.block_until_ready(out3k)
    np.testing.assert_allclose(np.asarray(out3k), np.asarray(ref3),
                               rtol=2e-2, atol=2e-3)

    print("KERNEL_OK")
</pallas_src>

<mosaic_0001>
module attributes {stable_mosaic.version = 11 : i64} {
  func.func @_continuous_conv_kernel(%arg0: i32, %arg1: i32, %arg2: memref<4xi32, #tpu.memory_space<smem>>, %arg3: memref<128x8xf32, #tpu.memory_space<vmem>>, %arg4: memref<8x128xf32, #tpu.memory_space<vmem>>, %arg5: memref<8x128xf32, #tpu.memory_space<vmem>>, %arg6: memref<8x128xf32, #tpu.memory_space<vmem>>) attributes {dimension_semantics = [#tpu.dimension_semantics<parallel>, #tpu.dimension_semantics<arbitrary>], iteration_bounds = array<i64: 2, 2>, scalar_prefetch = 1 : i64, scratch_operands = 0 : i64, tpu.core_type = #tpu.core_type<tc>, window_params = [{transform_indices = @transform_0, window_bounds = array<i64: 128, 8>}, {transform_indices = @transform_1, window_bounds = array<i64: 8, 128>}, {transform_indices = @transform_2, window_bounds = array<i64: 8, 128>}, {transform_indices = @transform_3, window_bounds = array<i64: 8, 128>}]} {
    %c0_i32 = arith.constant 0 : i32
    %0 = arith.cmpi eq, %arg1, %c0_i32 : i32
    %1 = arith.extui %0 : i1 to i32
    %c0_i32_0 = arith.constant 0 : i32
    %2 = arith.cmpi ne, %1, %c0_i32_0 : i32
    scf.if %2 {
      %cst = arith.constant 0.000000e+00 : f32
      %10 = vector.broadcast %cst : f32 to vector<8x128xf32>
      %c0 = arith.constant 0 : index
      %c0_3 = arith.constant 0 : index
      %11 = vector.load %arg6[%c0, %c0_3] : memref<8x128xf32, #tpu.memory_space<vmem>>, vector<8x128xf32>
      tpu.vector_store %arg6[%c0, %c0_3], %10 {strides = array<i32>} : memref<8x128xf32, #tpu.memory_space<vmem>>, vector<8x128xf32>,
    } else {
    }
    %c2_i32 = arith.constant 2 : i32
    %3 = arith.muli %arg0, %c2_i32 : i32
    %4 = arith.addi %3, %arg1 : i32
    %5 = arith.index_cast %4 : i32 to index
    %6 = memref.load %arg2[%5] : memref<4xi32, #tpu.memory_space<smem>>
    %c0_i32_1 = arith.constant 0 : i32
    %7 = arith.cmpi sgt, %6, %c0_i32_1 : i32
    %8 = arith.extui %7 : i1 to i32
    %c0_i32_2 = arith.constant 0 : i32
    %9 = arith.cmpi ne, %8, %c0_i32_2 : i32
    scf.if %9 {
      %c0 = arith.constant 0 : index
      %c0_3 = arith.constant 0 : index
      %10 = vector.load %arg3[%c0, %c0_3] : memref<128x8xf32, #tpu.memory_space<vmem>>, vector<128x8xf32>
      %c0_4 = arith.constant 0 : index
      %c0_5 = arith.constant 0 : index
      %11 = vector.load %arg4[%c0_4, %c0_5] : memref<8x128xf32, #tpu.memory_space<vmem>>, vector<8x128xf32>
      %cst = arith.constant dense<0.000000e+00> : vector<128x128xf32>
      %12 = tpu.matmul %10, %11, %cst {dimension_numbers = #tpu.dot_dimension_numbers<[1], [0], [0], [1], [0, 0, 1, 1], [], []>} : vector<128x8xf32>, vector<8x128xf32>, vector<128x128xf32> -> vector<128x128xf32>
      %cst_6 = arith.constant 0.000000e+00 : f32
      %13 = vector.broadcast %cst_6 : f32 to vector<128x128xf32>
      %14 = arith.cmpf ogt, %12, %13 : vector<128x128xf32>
      %15 = math.exp %12 : vector<128x128xf32>
      %cst_7 = arith.constant 0.000000e+00 : f32
      %16 = vector.broadcast %cst_7 : f32 to vector<128x128xf32>
      %17 = arith.select %14, %15, %16 : vector<128x128xi1>, vector<128x128xf32>
      %c0_8 = arith.constant 0 : index
      %c0_9 = arith.constant 0 : index
      %18 = vector.load %arg6[%c0_8, %c0_9] : memref<8x128xf32, #tpu.memory_space<vmem>>, vector<8x128xf32>
      %c0_10 = arith.constant 0 : index
      %c0_11 = arith.constant 0 : index
      %19 = vector.load %arg5[%c0_10, %c0_11] : memref<8x128xf32, #tpu.memory_space<vmem>>, vector<8x128xf32>
      %cst_12 = arith.constant dense<0.000000e+00> : vector<8x128xf32>
      %20 = tpu.matmul %19, %17, %cst_12 {dimension_numbers = #tpu.dot_dimension_numbers<[1], [0], [0], [1], [0, 0, 1, 1], [], []>} : vector<8x128xf32>, vector<128x128xf32>, vector<8x128xf32> -> vector<8x128xf32>
      %21 = arith.addf %18, %20 : vector<8x128xf32>
      %c0_13 = arith.constant 0 : index
      %c0_14 = arith.constant 0 : index
      %22 = vector.load %arg6[%c0_13, %c0_14] : memref<8x128xf32, #tpu.memory_space<vmem>>, vector<8x128xf32>
      tpu.vector_store %arg6[%c0_13, %c0_14], %21 {strides = array<i32>} : memref<8x128xf32, #tpu.memory_space<vmem>>, vector<8x128xf32>,
    } else {
    }
    return
  }
  func.func @transform_0(%arg0: i32, %arg1: i32, %arg2: memref<4xi32, #tpu.memory_space<smem>>) -> (i32, i32) {
    %c0_i32 = arith.constant 0 : i32
    %c0_i32_0 = arith.constant 0 : i32
    return %arg1, %c0_i32 : i32, i32
  }
  func.func @transform_1(%arg0: i32, %arg1: i32, %arg2: memref<4xi32, #tpu.memory_space<smem>>) -> (i32, i32) {
    %c0_i32 = arith.constant 0 : i32
    %c0_i32_0 = arith.constant 0 : i32
    return %c0_i32, %arg0 : i32, i32
  }
  func.func @transform_2(%arg0: i32, %arg1: i32, %arg2: memref<4xi32, #tpu.memory_space<smem>>) -> (i32, i32) {
    %c0_i32 = arith.constant 0 : i32
    %c0_i32_0 = arith.constant 0 : i32
    return %c0_i32, %arg1 : i32, i32
  }
  func.func @transform_3(%arg0: i32, %arg1: i32, %arg2: memref<4xi32, #tpu.memory_space<smem>>) -> (i32, i32) {
    %c0_i32 = arith.constant 0 : i32
    %c0_i32_0 = arith.constant 0 : i32
    return %c0_i32, %arg0 : i32, i32
  }
}

</mosaic_0001>

<bundles_post_ra>
// kernel: tpu_custom_call.1
= control target key start
LH: loop header
LB: loop body
LE: loop exit
PB: predicated region body
PF: predicated region fallthrough
CT: control target
= control target key end

     0   :  { %s1320_s0 = inlined_call_operand.vmem [shape: s32[4], index: 0, kind: input, shape index: {}]   ;;  %s1321_s1 = inlined_call_operand.vmem [shape: f32[256,8], index: 1, kind: input, shape index: {}]   ;;  %s1322_s2 = inlined_call_operand.vmem [shape: f32[8,256], index: 2, kind: input, shape index: {}]   ;;  %s1323_s3 = inlined_call_operand.vmem [shape: f32[8,256], index: 3, kind: input, shape index: {}]   ;;  %s1324_s4 = inlined_call_operand.hbm [shape: f32[8,256], index: 4, kind: output, shape index: {}]  }
   0x1   :  { %s9_s17 = sshll.u32 %s1320_s0, 4  ;;  %s10_s17 = int_to_ptr.vmem [resolvable:$true] %s9_s17 }
   0x2   :  { %s944_s18 = scalar_lea.vmem %s10_s17, 16  ;;  %p949_p1 = scmp.lt.s32.totalorder %s10_s17, %s10_s17 }
   0x3   :  { %p945_p0 = scmp.ne.s32.totalorder %s10_s17, %s944_s18  ;;  %p950_p2 = scmp.lt.s32.totalorder %s944_s18, %s944_s18 }
   0x5   :  { %p951_p3 = por %p950_p2, %p949_p1 }
   0x7   :  { %p952_p4 = pnand %p951_p3, %p945_p0 }
   0x9   :  { %955 = shalt.err (!%p952_p4)  }
   0xa   :  { %s1052_s19 = smov [#allocation3]  }
   0xb   :  { %12 = dma.vmem_to_smem %s10_s17, 16, %s1052_s19, [#allocation2] }
   0xc   :  { %1014 = dma.done.wait [#allocation2], 16 }
   0xd   :  { %1015 = vsyncadd [#allocation2], 4294967280 }
   0xe   :  { %14 = sfence }
   0xf   :  { %15 = vsyncpa [#allocation5], 0 }
  0x10   :  { %17 = vsyncpa [#allocation5 + $0x1], 0  ;;  %s1085_s20 = smov 0   ;;  %s1087_s21 = smov 0  }
  0x11   :  { %s1089_s0 = smov 0   ;;  %s1091_s22 = smov 0  }
  0x12   :  { %s1093_s23 = smov 0   ;;  %s1095_s24 = smov 0  }
  0x13   :  { %s1097_s25 = smov 0   ;;  %s1099_s26 = smov 0  }
  0x14 LB: > { %1328 = sst [smem:[#allocation8_spill]] %s1046_s25  ;;  %s693_s27 = sadd.s32 4294967295, %s1050_s26   ;;  %s1050_s26 = sphi %s1099_s26, %s23_s26   ;;  %s1046_s25 = sphi %s1097_s25, %s1336_s25   ;;  %s1042_s24 = sphi %s1095_s24, %s1341_s24   ;;  %s1038_s23 = sphi %s1093_s23, %s1334_s23   ;;  %s1034_s22 = sphi %s1091_s22, %s1340_s22   ;;  %s1030_s0 = sphi %s1089_s0, %s1339_s0   ;;  %s1026_s21 = sphi %s1087_s21, %s1338_s21   ;;  %s1022_s20 = sphi %s1085_s20, %s1337_s20  }
  0x15   : > { %s694_s28 = sadd.s32 4294967294, %s1050_s26   ;;  %s32_s29 = sadd.s32 1, %s1042_s24 }
  0x16   : > { %p33_p5 = scmp.ge.s32.totalorder %s32_s29, 2  ;;  %s35_s30 = sadd.s32 1, %s1046_s25 }
  0x17   : > { %p130_p6 = scmp.ne.s32.totalorder %s1030_s0, %s1026_s21  ;;  %p131_p7 = scmp.eq.s32.totalorder %s693_s27, 3 }
  0x18   : > { %s1343_s29 = smov (%p33_p5, %s32_s29), 0  ;;  %s1345_s30 = smov (!%p33_p5, %s35_s30), %s1046_s25 }
  0x19   : > { %1329 = sst [smem:[#allocation9_spill]] %s1343_s29  ;;  %p1134_p8 = por %p131_p7, %p130_p6 }
  0x1a   : > { %p136_p9 = scmp.ne.s32.totalorder %s1026_s21, %s1022_s20  ;;  %p37_p10 = scmp.ge.s32.totalorder %s1345_s30, 2 }
  0x1b   : > { %p137_p11 = scmp.eq.s32.totalorder %s694_s28, 3  ;;  %p697_p12 = scmp.ge.s32.totalorder %s1050_s26, 1 }
  0x1c   : > { %p178_p13 = scmp.lt.s32.totalorder %s1050_s26, 5  ;;  %s1347_s30 = smov (%p37_p10, %s1345_s30), 0 }
  0x1d   : > { %1331 = sst [smem:[#allocation10_spill]] %s1347_s30  ;;  %p1144_p0 = por %p137_p11, %p136_p9 }
  0x1e   : > { %p179_p1 = pnand %p697_p12, %p178_p13  ;;  %s117_s7 = ssub.s32 %s1046_s25, %s1347_s30 }
  0x1f   : > { %s120_s8 = sadd.s32 1, %s1030_s0  ;;  %p118_p2 = scmp.eq.s32.totalorder %s117_s7, 0 }
  0x20   : > { %182 = sbr.rel (%p179_p1) target bundleno = 554 (0x22a), region = 32  ;;  %s1326_s10 = sand.u32 (!%p179_p1), 1, %s1026_s21  }
  0x21   : > { %s1152_s9 = scalar_select %p118_p2, %s1030_s0, %s120_s8  }
  0x22   : > { %s699_s11 = sshll.u32 (!%p179_p1), %s1034_s22, 4  ;;  %s698_s12 = sshll.u32 (!%p179_p1), %s1326_s10, 3 }
  0x23   : > { %p211_p3 = scmp.lt.s32.totalorder (!%p179_p1), %s699_s11, 31  ;;  %p216_p4 = scmp.lt.s32.totalorder (!%p179_p1), %s1038_s23, 1 }
  0x24   : > { %p220_p5 = scmp.lt.s32.totalorder (!%p179_p1), %s1034_s22, 1  ;;  %s1175_s25 = scalar_lea.vmem (!%p179_p1), [#allocation4], %s698_s12 }
  0x25   : > { %s1349_s11 = smov (!%p211_p3, %s699_s11), 31  ;;  %p703_p6 = scmp.ne.s32.totalorder %s1034_s22, 0 }
  0x26   : > { %s217_s13 = scalar_select %p216_p4, %s1038_s23, 1 }
  0x27   : > { %s700_s14 = sshll.u32 %s1349_s11, 3 }
  0x28   : > { %s1164_s17 = scalar_lea.vmem %s1321_s1, %s700_s14  ;;  %s701_s18 = sshll.u32 %s217_s13, 3 }
  0x29   : > { %s219_s28 = scalar_lea.vmem %s1322_s2, %s701_s18  ;;  %227 = sbr.rel (%p703_p6) target bundleno = 48 (0x30), region = 36 }
  0x2a   : > { %s221_s7 = scalar_select %p220_p5, %s1034_s22, 1 }
  0x2c   : > { %s702_s8 = sshll.u32 %s221_s7, 3 }
  0x2d   : > { %s1173_s29 = scalar_lea.vmem %s1323_s3, %s702_s8 }
  0x2e   : > { %v1053_v0 = vmov 0.0  }
  0x2f   : > { %228 = vst [vmem:[%s1175_s25] sm:$0xff] %v1053_v0 }
  0x30 PF: > { %s704_s11 = sshll.u32 %s1038_s23, 1 }
  0x31   : > { %s230_s13 = sadd.s32 %s1034_s22, %s704_s11 }
  0x32   : > { %s231_s14 = sld [smem:[#allocation3 + %s230_s13]] }
  0x38   : > { %p705_p7 = scmp.le.s32.totalorder %s231_s14, 0 }
  0x3a   : > { %235 = sbr.rel (%p705_p7) target bundleno = 530 (0x212), region = 40 }
  0x3f   : > { %v252_v1 = vld [vmem:[%s219_s28] sm:$0xff]  ;;  %vm253_vm0 = vcmask 64512   ;;  %v237_v3 = vld [vmem:[%s1164_s17 + $0x8] sm:$0xff]  ;;  %v238_v4 = vld [vmem:[%s1164_s17 + $0x10] sm:$0xff]  ;;  %v1054_v18 = vmov 0.0   ;;  %vm1055_vm1 = vmmov 0  }
  0x40   : > { %v236_v2 = vld [vmem:[%s1164_s17] sm:$0xff]  ;;  %776 = vmatprep.subr.mxu0 %v252_v1  ;;  %v239_v5 = vld [vmem:[%s1164_s17 + $0x18] sm:$0xff]  ;;  %v241_v7 = vld [vmem:[%s1164_s17 + $0x28] sm:$0xff]  ;;  %802 = vmatprep.subr.mxu1 %v1054_v18 }
  0x41   : > { %778 = vmatprep.mubr.msk.f32.mxu0 %vm253_vm0, %v236_v2  ;;  %777 = vmatpush3.msra.mxu0 %v252_v1  ;;  %v240_v6 = vld [vmem:[%s1164_s17 + $0x20] sm:$0xff]  ;;  %v242_v8 = vld [vmem:[%s1164_s17 + $0x30] sm:$0xff]  ;;  %v243_v9 = vld [vmem:[%s1164_s17 + $0x38] sm:$0xff] }
  0x42   : > { %779 = vmatmul.mubr.msk.f32.vlgmr.msra.gmra.mxu0 %vm253_vm0, %v237_v3  ;;  %v244_v10 = vld [vmem:[%s1164_s17 + $0x40] sm:$0xff]  ;;  %v245_v11 = vld [vmem:[%s1164_s17 + $0x48] sm:$0xff]  ;;  %v246_v12 = vld [vmem:[%s1164_s17 + $0x50] sm:$0xff]  ;;  %834 = vmatprep.mubr.msk.f32.mxu1 %vm1055_vm1, %v1054_v18 }
  0x43   : > { %781 = vmatprep.mubr.msk.f32.mxu0 %vm253_vm0, %v238_v4  ;;  %v247_v13 = vld [vmem:[%s1164_s17 + $0x58] sm:$0xff]  ;;  %v248_v14 = vld [vmem:[%s1164_s17 + $0x60] sm:$0xff]  ;;  %v249_v15 = vld [vmem:[%s1164_s17 + $0x68] sm:$0xff] }
  0x44   : > { %v250_v16 = vld [vmem:[%s1164_s17 + $0x70] sm:$0xff]  ;;  %v251_v17 = vld [vmem:[%s1164_s17 + $0x78] sm:$0xff]  ;;  %v512_v2 = vld [vmem:[%s1173_s29] sm:$0xff] }
  0x45   : > { %v511_v4 = vld [vmem:[%s1175_s25] sm:$0xff] }
  0x46   : > { %782 = vmatmul.mubr.msk.f32.gmra.mxu0 %vm253_vm0, %v239_v5 }
  0x47   : > { %784 = vmatprep.mubr.msk.f32.mxu0 %vm253_vm0, %v240_v6 }
  0x4a   : > { %785 = vmatmul.mubr.msk.f32.gmra.mxu0 %vm253_vm0, %v241_v7 }
  0x4b   : > { %787 = vmatprep.mubr.msk.f32.mxu0 %vm253_vm0, %v242_v8 }
  0x4e   : > { %788 = vmatmul.mubr.msk.f32.gmra.mxu0 %vm253_vm0, %v243_v9 }
  0x4f   : > { %790 = vmatprep.mubr.msk.f32.mxu0 %vm253_vm0, %v244_v10 }
  0x52   : > { %791 = vmatmul.mubr.msk.f32.gmra.mxu0 %vm253_vm0, %v245_v11 }
  0x53   : > { %793 = vmatprep.mubr.msk.f32.mxu0 %vm253_vm0, %v246_v12 }
  0x56   : > { %794 = vmatmul.mubr.msk.f32.gmra.mxu0 %vm253_vm0, %v247_v13 }
  0x57   : > { %796 = vmatprep.mubr.msk.f32.mxu0 %vm253_vm0, %v248_v14 }
  0x5a   : > { %797 = vmatmul.mubr.msk.f32.gmra.mxu0 %vm253_vm0, %v249_v15 }
  0x5b   : > { %799 = vmatprep.mubr.msk.f32.mxu0 %vm253_vm0, %v250_v16 }
  0x5e   : > { %800 = vmatmul.mubr.msk.f32.gmra.mxu0 %vm253_vm0, %v251_v17 }
 0x102   : > { %v1215_v19 = vpop.f32.mrf.mxu0 }
 0x103   : > { %v465_v55 = vmul.f32 1.442695, %v1215_v19  ;;  %vm448_vm0 = vcmp.gt.f32.partialorder %v1215_v19, 0.0 }
 0x104   : > { %v1217_v20 = vpop.f32.mrf.mxu0 }
 0x105   : > { %v463_v57 = vmul.f32 1.442695, %v1217_v20  ;;  %vm447_vm1 = vcmp.gt.f32.partialorder %v1217_v20, 0.0 }
 0x106   : > { %v1219_v21 = vpop.f32.mrf.mxu0 }
 0x107   : > { %v469_v51 = vmul.f32 1.442695, %v1219_v21  ;;  %vm450_vm14 = vcmp.gt.f32.partialorder %v1219_v21, 0.0 }
 0x108   : > { %v1221_v22 = vpop.f32.mrf.mxu0 }
 0x109   : > { %v467_v53 = vmul.f32 1.442695, %v1221_v22  ;;  %vm449_vm15 = vcmp.gt.f32.partialorder %v1221_v22, 0.0 }
 0x10a   : > { %v1223_v23 = vpop.f32.mrf.mxu0 }
 0x10b   : > { %v473_v47 = vmul.f32 1.442695, %v1223_v23  ;;  %vm452_vm12 = vcmp.gt.f32.partialorder %v1223_v23, 0.0 }
 0x10c   : > { %v1225_v24 = vpop.f32.mrf.mxu0 }
 0x10d   : > { %v471_v49 = vmul.f32 1.442695, %v1225_v24  ;;  %vm451_vm13 = vcmp.gt.f32.partialorder %v1225_v24, 0.0 }
 0x10e   : > { %v1227_v25 = vpop.f32.mrf.mxu0 }
 0x10f   : > { %v477_v43 = vmul.f32 1.442695, %v1227_v25  ;;  %vm454_vm10 = vcmp.gt.f32.partialorder %v1227_v25, 0.0 }
 0x110   : > { %v1229_v26 = vpop.f32.mrf.mxu0 }
 0x111   : > { %v475_v45 = vmul.f32 1.442695, %v1229_v26  ;;  %vm453_vm11 = vcmp.gt.f32.partialorder %v1229_v26, 0.0 }
 0x112   : > { %v1231_v27 = vpop.f32.mrf.mxu0 }
 0x113   : > { %v481_v41 = vmul.f32 1.442695, %v1231_v27  ;;  %vm456_vm8 = vcmp.gt.f32.partialorder %v1231_v27, 0.0 }
 0x114   : > { %v1233_v28 = vpop.f32.mrf.mxu0 }
 0x115   : > { %v479_v42 = vmul.f32 1.442695, %v1233_v28  ;;  %vm455_vm9 = vcmp.gt.f32.partialorder %v1233_v28, 0.0 }
 0x116   : > { %v795_v29 = vpop.f32.mrf.mxu0 }
 0x117   : > { %v485_v39 = vmul.f32 1.442695, %v795_v29  ;;  %vm458_vm6 = vcmp.gt.f32.partialorder %v795_v29, 0.0 }
 0x118   : > { %v418_v30 = vpop.f32.mrf.mxu0 }
 0x119   : > { %v483_v40 = vmul.f32 1.442695, %v418_v30  ;;  %vm457_vm7 = vcmp.gt.f32.partialorder %v418_v30, 0.0 }
 0x11a   : > { %v798_v31 = vpop.f32.mrf.mxu0 }
 0x11b   : > { %v489_v36 = vmul.f32 1.442695, %v798_v31  ;;  %vm460_vm4 = vcmp.gt.f32.partialorder %v798_v31, 0.0 }
 0x11c   : > { %v428_v32 = vpop.f32.mrf.mxu0 }
 0x11d   : > { %v487_v38 = vmul.f32 1.442695, %v428_v32  ;;  %vm459_vm5 = vcmp.gt.f32.partialorder %v428_v32, 0.0 }
 0x11e   : > { %v801_v33 = vpop.f32.mrf.mxu0 }
 0x11f   : > { %v493_v34 = vmul.f32 1.442695, %v801_v33  ;;  %vm462_vm2 = vcmp.gt.f32.partialorder %v801_v33, 0.0 }
 0x120   : > { %v438_v35 = vpop.f32.mrf.mxu0 }
 0x121   : > { %912 = vpow2.f32 %v493_v34  ;;  %v491_v37 = vmul.f32 1.442695, %v438_v35  ;;  %vm461_vm3 = vcmp.gt.f32.partialorder %v438_v35, 0.0 }
 0x123   : > { %914 = vpow2.f32 %v491_v37 }
 0x124   : > { %916 = vpow2.f32 %v489_v36 }
 0x125   : > { %918 = vpow2.f32 %v487_v38 }
 0x126   : > { %920 = vpow2.f32 %v485_v39 }
 0x127   : > { %922 = vpow2.f32 %v483_v40 }
 0x128   : > { %924 = vpow2.f32 %v481_v41 }
 0x129   : > { %926 = vpow2.f32 %v479_v42 }
 0x12a   : > { %928 = vpow2.f32 %v477_v43 }
 0x12b   : > { %930 = vpow2.f32 %v475_v45 }
 0x12c   : > { %932 = vpow2.f32 %v473_v47 }
 0x12d   : > { %934 = vpow2.f32 %v471_v49 }
 0x12e   : > { %v913_v44 = vpop.eup %912  ;;  %936 = vpow2.f32 %v469_v51 }
 0x12f   : > { %803 = vmatpush3.msk.msra.mxu1 %vm462_vm2, %v913_v44  ;;  %938 = vpow2.f32 %v467_v53 }
 0x130   : > { %v915_v46 = vpop.eup %914  ;;  %804 = vmatprep.subr.mxu1 %v1054_v18  ;;  %940 = vpow2.f32 %v465_v55 }
 0x131   : > { %805 = vmatpush3.msk.msra.mxu1 %vm461_vm3, %v915_v46  ;;  %v917_v48 = vpop.eup %916  ;;  %942 = vpow2.f32 %v463_v57 }
 0x132   : > { %806 = vmatprep.subr.mxu1 %v1054_v18  ;;  %v919_v50 = vpop.eup %918 }
 0x133   : > { %807 = vmatpush3.msk.msra.mxu1 %vm460_vm4, %v917_v48  ;;  %v921_v52 = vpop.eup %920 }
 0x134   : > { %808 = vmatprep.subr.mxu1 %v1054_v18  ;;  %v923_v54 = vpop.eup %922 }
 0x135   : > { %809 = vmatpush3.msk.msra.mxu1 %vm459_vm5, %v919_v50  ;;  %v925_v56 = vpop.eup %924 }
 0x136   : > { %810 = vmatprep.subr.mxu1 %v1054_v18  ;;  %v927_v58 = vpop.eup %926 }
 0x137   : > { %811 = vmatpush3.msk.msra.mxu1 %vm458_vm6, %v921_v52  ;;  %v929_v59 = vpop.eup %928 }
 0x138   : > { %812 = vmatprep.subr.mxu1 %v1054_v18  ;;  %v931_v60 = vpop.eup %930 }
 0x139   : > { %813 = vmatpush3.msk.msra.mxu1 %vm457_vm7, %v923_v54  ;;  %v933_v61 = vpop.eup %932 }
 0x13a   : > { %814 = vmatprep.subr.mxu1 %v1054_v18  ;;  %v935_v62 = vpop.eup %934 }
 0x13b   : > { %815 = vmatpush3.msk.msra.mxu1 %vm456_vm8, %v925_v56  ;;  %v937_v63 = vpop.eup %936 }
 0x13c   : > { %816 = vmatprep.subr.mxu1 %v1054_v18  ;;  %v939_v0 = vpop.eup %938 }
 0x13d   : > { %817 = vmatpush3.msk.msra.mxu1 %vm455_vm9, %v927_v58  ;;  %v941_v1 = vpop.eup %940 }
 0x13e   : > { %818 = vmatprep.subr.mxu1 %v1054_v18  ;;  %v943_v3 = vpop.eup %942 }
 0x13f   : > { %819 = vmatpush3.msk.msra.mxu1 %vm454_vm10, %v929_v59 }
 0x140   : > { %820 = vmatprep.subr.mxu1 %v1054_v18 }
 0x141   : > { %821 = vmatpush3.msk.msra.mxu1 %vm453_vm11, %v931_v60 }
 0x142   : > { %822 = vmatprep.subr.mxu1 %v1054_v18 }
 0x143   : > { %823 = vmatpush3.msk.msra.mxu1 %vm452_vm12, %v933_v61 }
 0x144   : > { %824 = vmatprep.subr.mxu1 %v1054_v18 }
 0x145   : > { %825 = vmatpush3.msk.msra.mxu1 %vm451_vm13, %v935_v62 }
 0x146   : > { %826 = vmatprep.subr.mxu1 %v1054_v18 }
 0x147   : > { %827 = vmatpush3.msk.msra.mxu1 %vm450_vm14, %v937_v63 }
 0x148   : > { %828 = vmatprep.subr.mxu1 %v1054_v18 }
 0x149   : > { %829 = vmatpush3.msk.msra.mxu1 %vm449_vm15, %v939_v0 }
 0x14a   : > { %830 = vmatprep.subr.mxu1 %v1054_v18 }
 0x14b   : > { %831 = vmatpush3.msk.msra.mxu1 %vm448_vm0, %v941_v1 }
 0x14c   : > { %832 = vmatprep.subr.mxu1 %v1054_v18 }
 0x14d   : > { %833 = vmatpush3.msk.msra.mxu1 %vm447_vm1, %v943_v3 }
 0x14e   : > { %835 = vmatmul.mubr.f32.vlgmr.msra.gmra.mxu1 %v512_v2 }
 0x20e   : > { %v579_v5 = vpop.f32.mrf.mxu1 }
 0x20f   : > { %v583_v6 = vadd.f32 %v579_v5, %v511_v4 }
 0x210   : > { %v836_v7 = vpop.f32.mrf.mxu1 }
 0x211   : > { %584 = vst [vmem:[%s1175_s25] sm:$0xff] %v583_v6 }
 0x212 PF: > { %s739_s22 = sshll.u32 %s1038_s23, 7  ;;  %s599_s12 = sshll.u32 %s1175_s25, 4  ;;  %s600_s12 = int_to_ptr.vmem [resolvable:$true] %s599_s12 }
 0x213   : > { %s597_s10 = scalar_lea.hbm %s1324_s4, %s739_s22  ;;  %s1333_s15 = sand.u32 1, %s1026_s21  }
 0x214   : > { %s586_s16 = scalar_lea.sflag [#allocation5], %s1333_s15  ;;  %s956_s17 = scalar_lea.vmem %s600_s12, 128 }
 0x215   : > { %p957_p9 = scmp.ne.s32.totalorder %s600_s12, %s956_s17  ;;  %s1056_s18 = smov [#allocation4]  }
 0x216   : > { %s960_s19 = sshll.u32 %s1056_s18, 4  ;;  %s961_s19 = int_to_ptr.vmem [resolvable:$false] %s960_s19 }
 0x217   : > { %p958_p10 = pnand %p957_p9, %p1134_p8  ;;  %s962_s27 = scalar_lea.vmem %s961_s19, 256 }
 0x218   : > { %p963_p12 = scmp.lt.s32.totalorder %s600_s12, %s961_s19  ;;  %p964_p13 = scmp.lt.s32.totalorder %s962_s27, %s956_s17 }
 0x219   : > { %p959_p11 = pneg %p958_p10 }
 0x21a   : > { %p965_p1 = por %p964_p13, %p963_p12 }
 0x21c   : > { %p966_p2 = pnand %p965_p1, %p959_p11 }
 0x21e   : > { %969 = shalt.err (!%p966_p2)
}
 0x21f   : > { %s970_s23 = scalar_lea.hbm %s597_s10, 128  ;;  %s974_s7 = scalar_lea.hbm %s1324_s4, 256 }
 0x220   : > { %p971_p3 = scmp.ne.s32.totalorder %s597_s10, %s970_s23  ;;  %p975_p6 = scmp.lt.s32.totalorder %s597_s10, %s1324_s4 }
 0x221   : > { %p976_p7 = scmp.lt.s32.totalorder %s974_s7, %s970_s23 }
 0x222   : > { %p972_p4 = pnand %p971_p3, %p1134_p8 }
 0x223   : > { %p977_p9 = por %p976_p7, %p975_p6 }
 0x224   : > { %p973_p5 = pneg %p972_p4 }
 0x226   : > { %p978_p10 = pnand %p977_p9, %p973_p5 }
 0x228   : > { %981 = shalt.err (!%p978_p10)
}
 0x229   : > { %837 = dma.vmem_to_hbm [thread:$0]  (%p1134_p8), %s600_s12, 128, %s597_s10, %s586_s16  }
 0x22a PF: > { %p843_p11 = scmp.ge.s32.totalorder %s1050_s26, 2  ;;  %s611_s13 = sand.u32 1, %s1022_s20  }
 0x22b   : > { %s612_s14 = scalar_lea.sflag [#allocation5], %s611_s13 }
 0x22c   : > { %p840_p12 = pnand %p843_p11, %p1144_p0 }
 0x22e   : > { %p841_p13 = pneg %p840_p12 }
 0x230   : > { %1017 = dma.done.wait (%p841_p13), %s612_s14, 128  }
 0x231   : > { %1019 = vsyncadd (%p841_p13), %s612_s14, 4294967168  ;;  %s23_s26 = sadd.s32 1, %s1050_s26   ;;  %s1334_s23 = sld [smem:[#allocation8_spill]] }
 0x232   : > { %p20_p1 = scmp.ge.s32.totalorder %s23_s26, 6   ;;  %s1335_s5 = sld [smem:[#allocation9_spill]] }
 0x233   : > { %s1336_s25 = sld [smem:[#allocation10_spill]]  ;;  %s1337_s20 = smov %s1026_s21 }
 0x234   : > { %s1338_s21 = smov %s1030_s0  ;;  %s1339_s0 = smov %s1152_s9 }
 0x235   : > { %s1340_s22 = smov %s1042_s24  ;;  %22 = sbr.rel (!%p20_p1) target bundleno = 20 (0x14), region = 81 }
 0x238   : > { %s1341_s24 = smov %s1335_s5 }
 0x23a   :  { %617 = vsyncpa [#allocation5], 1 }
 0x23b   :  { %619 = vsyncpa [#allocation5 + $0x1], 1 }

</bundles_post_ra>
